<compile_context>
chip_gen: v6e
topology: v6e:2x2x1
jax: 0.10.0
libtpu: 0.0.40
codegen_flags: <defaults>
</compile_context>

<pallas_src>
import jax
import jax.numpy as jnp
from jax.experimental import pallas as pl
from jax.experimental.pallas import tpu as pltpu

NEG_SLOPE = 0.01   # nn.LeakyReLU() default
BN_EPS = 1e-5      # nn.BatchNorm2d default


def _vmem():
    # Whole-array block resident in VMEM (every operand here is a few KiB).
    return pl.BlockSpec(memory_space=pltpu.MemorySpace.VMEM)


# ------------------------------ fused kernel -------------------------------

def fused_cnn_kernel(p_ref, w4_ref, shift_ref, fcw_ref, fcb_ref, ind_ref, o_ref):
    """Conv3x3 (+folded BN) + LeakyReLU + MaxPool2x2 + Flatten + Linear, fused.

    p_ref    : (Cin*16, L)      bf16  4x4/stride-2 patches; lanes l = (n,ph,pw).
    w4_ref   : (4*Cout, Cin*16) bf16  pool-tap-expanded folded conv weights.
    shift_ref: (4*Cout, 1)      f32   folded conv bias + BN shift (tap-tiled).
    fcw_ref  : (num_out, Cout, L) f32 FC weights, NCHW-flatten folded, channels
                                      on sublanes, replicated per batch block.
    fcb_ref  : (1, num_out)     f32
    ind_ref  : (N, L)           f32   batch lane-block indicator.
    o_ref    : (N, num_out)     f32   logits.
    """
    # Conv (+folded BN) for all four 2x2-pool taps: one lane-dense bf16 MXU
    # matmul, f32 accumulation.  Rows are tap-major: [tap0|tap1|tap2|tap3]*Cout.
    y = jnp.dot(w4_ref[...], p_ref[...], preferred_element_type=jnp.float32)
    y = y + shift_ref[...]                       # folded conv bias + BN affine
    y = jnp.where(y > 0, y, NEG_SLOPE * y)       # LeakyReLU(0.01), f32 on VPU

    # 2x2 max-pool: the four taps are four Cout-row sublane blocks -> 3 maxes.
    cout = shift_ref.shape[0] // 4
    pooled = jnp.maximum(
        jnp.maximum(y[0 * cout:1 * cout], y[1 * cout:2 * cout]),
        jnp.maximum(y[2 * cout:3 * cout], y[3 * cout:4 * cout]))   # (Cout, L)

    # Fully connected layer, lane-dense throughout:
    #   contract channels on the sublane axis (flatten permutation lives in fcw),
    #   then reduce each batch's lane block with an indicator matmul.
    m = jnp.sum(pooled[None, :, :] * fcw_ref[...], axis=1)          # (num_out, L)
    out = jax.lax.dot_general(ind_ref[...], m, (((1,), (1,)), ((), ())),
                              preferred_element_type=jnp.float32)   # (N, num_out)
    o_ref[...] = out + fcb_ref[...]


# --------------------- one-time weight folding (no jit) ---------------------

def fold_params(params):
    """Fold BN + conv bias into W4 (pool-tap expanded) and reshape the FC
    weight for the NCHW flatten.  Batch-size independent."""
    conv_w = params["conv_w"].astype(jnp.float32)             # (Cout, Cin, 3, 3)
    cout, cin = conv_w.shape[0], conv_w.shape[1]

    scale = params["bn_gamma"] / jnp.sqrt(params["bn_var"] + BN_EPS)
    w_fold = conv_w * scale[:, None, None, None]
    shift = scale * (params["conv_b"] - params["bn_mean"]) + params["bn_beta"]

    # Expand the 3x3 kernel to (4 pool-taps * Cout, Cin*4*4): one matmul against
    # 4x4/stride-2 patches yields the conv output at all four 2x2-pool taps.
    # Row = t*Cout + co (t = th*2 + tw), col = ci*16 + d*4 + e,
    # value = w_fold[co, ci, d-th, e-tw] when 0 <= d-th,e-tw < 3, else 0.
    w4 = jnp.zeros((4, cout, cin, 4, 4), jnp.float32)
    for th in range(2):
        for tw in range(2):
            w4 = w4.at[th * 2 + tw, :, :, th:th + 3, tw:tw + 3].set(w_fold)
    w4 = w4.reshape(4 * cout, cin * 16).astype(jnp.bfloat16)

    shift4 = jnp.tile(shift, (4,)).reshape(4 * cout, 1).astype(jnp.float32)

    # PyTorch Linear weight is (out_features, in_features); flatten is NCHW so
    # in_feature index = c*S + ph*Wp + pw  ->  (num_out, Cout, S).
    fc_w = params["fc_w"].astype(jnp.float32)
    num_out = fc_w.shape[0]
    s = fc_w.shape[1] // cout
    fc_w3 = fc_w.reshape(num_out, cout, s)
    fc_b = params["fc_b"].reshape(1, num_out).astype(jnp.float32)
    return dict(w4=w4, shift4=shift4, fc_w3=fc_w3, fc_b=fc_b)


# ------------------------------ forward pass -------------------------------

def cnn_forward(x_nchw, kparams):
    n, cin, height, width = x_nchw.shape
    # TODO(synk): MaxPool2d ceil_mode padding for odd H/W not implemented
    # (H=W=16 here, so ceil_mode is a no-op).
    assert height % 2 == 0 and width % 2 == 0
    hp, wp = height // 2, width // 2
    s = hp * wp
    lanes = n * s                      # layout is tuned for lanes % 128 == 0
    num_out = kparams["fc_b"].shape[1]
    cout4 = kparams["w4"].shape[0]

    # Single-HLO patch extraction: each 4x4/stride-2 window holds every input
    # pixel needed by the 3x3 conv for all four pool taps of one pooled cell.
    # Output feature ordering is ci*16 + d*4 + e (channel major, row-major 4x4).
    p4 = jax.lax.conv_general_dilated_patches(
        x_nchw.astype(jnp.bfloat16), filter_shape=(4, 4),
        window_strides=(2, 2), padding=((1, 1), (1, 1)))   # (N, Cin*16, Hp, Wp)
    patches = p4.transpose(1, 0, 2, 3).reshape(cin * 16, lanes)   # bf16

    # Batch replication of the tiny FC weight + the batch indicator are built
    # here (inside jit), keeping the folded params batch-independent.
    fcw = jnp.tile(kparams["fc_w3"], (1, 1, n))               # (num_out, Cout, L)
    ind = (jax.lax.broadcasted_iota(jnp.int32, (n, lanes), 1) // s ==
           jax.lax.broadcasted_iota(jnp.int32, (n, lanes), 0)
           ).astype(jnp.float32)                              # (N, L)

    cost = pl.CostEstimate(
        flops=2 * cout4 * cin * 16 * lanes        # conv matmul
              + 2 * fcw.size                      # FC channel contraction
              + 2 * n * lanes * num_out,          # indicator matmul
        transcendentals=0,
        bytes_accessed=(patches.size * 2 + kparams["w4"].size * 2
                        + kparams["shift4"].size * 4 + fcw.size * 4
                        + ind.size * 4 + num_out * 4 + n * num_out * 4))

    return pl.pallas_call(
        fused_cnn_kernel,
        out_shape=jax.ShapeDtypeStruct((n, num_out), jnp.float32),
        in_specs=[_vmem()] * 6,
        out_specs=_vmem(),
        cost_estimate=cost,
    )(patches, kparams["w4"], kparams["shift4"], fcw, kparams["fc_b"], ind)


# -------------------------- pure-JAX reference ------------------------------

def reference_forward(x, params):
    """Eval-mode CNNModel.forward in plain JAX (conv operands rounded through
    bf16 to mirror the kernel's MXU operand dtype)."""
    scale = params["bn_gamma"] / jnp.sqrt(params["bn_var"] + BN_EPS)
    w = (params["conv_w"] * scale[:, None, None, None])
    w = w.astype(jnp.bfloat16).astype(jnp.float32)
    xq = x.astype(jnp.bfloat16).astype(jnp.float32)
    y = jax.lax.conv_general_dilated(
        xq, w, window_strides=(1, 1), padding=((1, 1), (1, 1)),
        dimension_numbers=("NCHW", "OIHW", "NCHW"),
        precision=jax.lax.Precision.HIGHEST)
    shift = scale * (params["conv_b"] - params["bn_mean"]) + params["bn_beta"]
    y = y + shift[None, :, None, None]
    y = jnp.where(y > 0, y, NEG_SLOPE * y)
    n, c, h, w_ = y.shape
    pooled = y.reshape(n, c, h // 2, 2, w_ // 2, 2).max(axis=(3, 5))
    flat = pooled.reshape(n, -1)
    return jnp.einsum("nf,of->no", flat, params["fc_w"],
                      precision=jax.lax.Precision.HIGHEST) + params["fc_b"]


# ----------------------------- parameter init ------------------------------

def init_params(key, cin, cout, height, width, num_classes=2):
    k1, k2, k3 = jax.random.split(key, 3)
    # Conv2d: xavier_uniform weight, PyTorch-default uniform bias.
    fan_in, fan_out = cin * 9, cout * 9
    bound = (6.0 / (fan_in + fan_out)) ** 0.5
    conv_w = jax.random.uniform(k1, (cout, cin, 3, 3), jnp.float32, -bound, bound)
    b_bound = 1.0 / (fan_in ** 0.5)
    conv_b = jax.random.uniform(k2, (cout,), jnp.float32, -b_bound, b_bound)
    # BatchNorm2d fresh-init running stats / affine.
    bn_gamma = jnp.ones((cout,), jnp.float32)
    bn_beta = jnp.zeros((cout,), jnp.float32)
    bn_mean = jnp.zeros((cout,), jnp.float32)
    bn_var = jnp.ones((cout,), jnp.float32)
    # Linear: xavier_uniform weight (out_features, in_features), bias = 0.01.
    hp, wp = height // 2, width // 2
    fc_in = cout * hp * wp
    fc_bound = (6.0 / (fc_in + num_classes)) ** 0.5
    fc_w = jax.random.uniform(k3, (num_classes, fc_in), jnp.float32,
                              -fc_bound, fc_bound)
    fc_b = jnp.full((num_classes,), 0.01, jnp.float32)
    return dict(conv_w=conv_w, conv_b=conv_b,
                bn_gamma=bn_gamma, bn_beta=bn_beta,
                bn_mean=bn_mean, bn_var=bn_var,
                fc_w=fc_w, fc_b=fc_b)


if __name__ == "__main__":
    key = jax.random.PRNGKey(0)
    kp, kx = jax.random.split(key)

    N, Cin, H, W = 2, 1, 16, 16   # NCHW, matches Conv2d(1, inplanes, ...)
    Cout = 8                      # small stand-in for TRUE_DATA_CNN_INPLANES=64
    params = init_params(kp, Cin, Cout, H, W, num_classes=2)
    kparams = fold_params(params)          # one-time, batch-size independent
    x = jax.random.normal(kx, (N, Cin, H, W), jnp.float32)

    # TODO(synk): train-mode Dropout / BatchNorm batch-statistics not
    # implemented (eval semantics, as specified).
    fwd = jax.jit(cnn_forward)
    out = fwd(x, kparams)
    jax.block_until_ready(out)
    assert out.shape == (N, 2) and out.dtype == jnp.float32

    ref = reference_forward(x, params)
    err = float(jnp.max(jnp.abs(out - ref)))
    assert err < 2e-3, f"kernel/reference mismatch, max abs err {err}"
    print("KERNEL_OK")
</pallas_src>

<mosaic_0001>
module attributes {stable_mosaic.version = 11 : i64} {
  func.func @fused_cnn_kernel(%arg0: memref<16x128xbf16, #tpu.memory_space<vmem>>, %arg1: memref<32x16xbf16, #tpu.memory_space<vmem>>, %arg2: memref<32x1xf32, #tpu.memory_space<vmem>>, %arg3: memref<2x8x128xf32, #tpu.memory_space<vmem>>, %arg4: memref<1x2xf32, #tpu.memory_space<vmem>>, %arg5: memref<2x128xf32, #tpu.memory_space<vmem>>, %arg6: memref<2x2xf32, #tpu.memory_space<vmem>>) attributes {dimension_semantics = [], scalar_prefetch = 0 : i64, scratch_operands = 0 : i64, tpu.core_type = #tpu.core_type<tc>} {
    %c0 = arith.constant 0 : index
    %c0_0 = arith.constant 0 : index
    %0 = vector.load %arg1[%c0, %c0_0] : memref<32x16xbf16, #tpu.memory_space<vmem>>, vector<32x16xbf16>
    %c0_1 = arith.constant 0 : index
    %c0_2 = arith.constant 0 : index
    %1 = vector.load %arg0[%c0_1, %c0_2] : memref<16x128xbf16, #tpu.memory_space<vmem>>, vector<16x128xbf16>
    %cst = arith.constant dense<0.000000e+00> : vector<32x128xf32>
    %2 = tpu.matmul %0, %1, %cst {dimension_numbers = #tpu.dot_dimension_numbers<[1], [0], [0], [1], [0, 0, 1, 1], [], []>} : vector<32x16xbf16>, vector<16x128xbf16>, vector<32x128xf32> -> vector<32x128xf32>
    %c0_3 = arith.constant 0 : index
    %c0_4 = arith.constant 0 : index
    %3 = vector.load %arg2[%c0_3, %c0_4] : memref<32x1xf32, #tpu.memory_space<vmem>>, vector<32x1xf32>
    %4 = vector.broadcast %3 : vector<32x1xf32> to vector<32x128xf32>
    %5 = arith.addf %2, %4 : vector<32x128xf32>
    %cst_5 = arith.constant 0.000000e+00 : f32
    %6 = vector.broadcast %cst_5 : f32 to vector<32x128xf32>
    %7 = arith.cmpf ogt, %5, %6 : vector<32x128xf32>
    %cst_6 = arith.constant 0.00999999977 : f32
    %8 = vector.broadcast %cst_6 : f32 to vector<32x128xf32>
    %9 = arith.mulf %8, %5 : vector<32x128xf32>
    %10 = arith.select %7, %5, %9 : vector<32x128xi1>, vector<32x128xf32>
    %11 = vector.extract_strided_slice %10 {offsets = [0, 0], sizes = [8, 128], strides = [1, 1]} : vector<32x128xf32> to vector<8x128xf32>
    %12 = vector.extract_strided_slice %10 {offsets = [8, 0], sizes = [8, 128], strides = [1, 1]} : vector<32x128xf32> to vector<8x128xf32>
    %13 = arith.maximumf %11, %12 : vector<8x128xf32>
    %14 = vector.extract_strided_slice %10 {offsets = [16, 0], sizes = [8, 128], strides = [1, 1]} : vector<32x128xf32> to vector<8x128xf32>
    %15 = vector.extract_strided_slice %10 {offsets = [24, 0], sizes = [8, 128], strides = [1, 1]} : vector<32x128xf32> to vector<8x128xf32>
    %16 = arith.maximumf %14, %15 : vector<8x128xf32>
    %17 = arith.maximumf %13, %16 : vector<8x128xf32>
    %18 = vector.shape_cast %17 : vector<8x128xf32> to vector<1x8x128xf32>
    %c0_7 = arith.constant 0 : index
    %c0_8 = arith.constant 0 : index
    %c0_9 = arith.constant 0 : index
    %19 = vector.load %arg3[%c0_7, %c0_8, %c0_9] : memref<2x8x128xf32, #tpu.memory_space<vmem>>, vector<2x8x128xf32>
    %20 = vector.broadcast %18 : vector<1x8x128xf32> to vector<2x8x128xf32>
    %21 = arith.mulf %20, %19 : vector<2x8x128xf32>
    %cst_10 = arith.constant dense<0.000000e+00> : vector<2x128xf32>
    %22 = vector.multi_reduction <add>, %21, %cst_10 [1] : vector<2x8x128xf32> to vector<2x128xf32>
    %c0_11 = arith.constant 0 : index
    %c0_12 = arith.constant 0 : index
    %23 = vector.load %arg5[%c0_11, %c0_12] : memref<2x128xf32, #tpu.memory_space<vmem>>, vector<2x128xf32>
    %cst_13 = arith.constant dense<0.000000e+00> : vector<2x2xf32>
    %24 = tpu.matmul %23, %22, %cst_13 {dimension_numbers = #tpu.dot_dimension_numbers<[1], [1], [0], [0], [0, 0, 1, 0], [], []>} : vector<2x128xf32>, vector<2x128xf32>, vector<2x2xf32> -> vector<2x2xf32>
    %c0_14 = arith.constant 0 : index
    %c0_15 = arith.constant 0 : index
    %25 = vector.load %arg4[%c0_14, %c0_15] : memref<1x2xf32, #tpu.memory_space<vmem>>, vector<1x2xf32>
    %26 = vector.broadcast %25 : vector<1x2xf32> to vector<2x2xf32>
    %27 = arith.addf %24, %26 : vector<2x2xf32>
    %c0_16 = arith.constant 0 : index
    %c0_17 = arith.constant 0 : index
    %28 = vector.load %arg6[%c0_16, %c0_17] : memref<2x2xf32, #tpu.memory_space<vmem>>, vector<2x2xf32>
    tpu.vector_store %arg6[%c0_16, %c0_17], %27 {strides = array<i32>} : memref<2x2xf32, #tpu.memory_space<vmem>>, vector<2x2xf32>,
    return
  }
}

</mosaic_0001>

<bundles_post_ra>
// kernel: tile.9
= control target key start
LH: loop header
LB: loop body
LE: loop exit
PB: predicated region body
PF: predicated region fallthrough
CT: control target
= control target key end

     0   :  { %vm83_vm0 = vcmask 1047556   ;;  %vm85_vm1 = vcmask 523264   ;;  %vm104_vm2 = vcmask 1048064   ;;  %s226_s0 = inlined_call_operand.vmem [shape: f32[2,8,2,64], index: 0, kind: input, shape index: {}]   ;;  %s227_s1 = inlined_call_operand.vmem [shape: f32[2,8,128], index: 1, kind: output, shape index: {}]  }
   0x1   :  { %v139_v0 = vld [vmem:[%s226_s0 + $0xe] sm:$0x3]  ;;  %v140_v1 = vld [vmem:[%s226_s0 + $0xc] sm:$0x3]  ;;  %v141_v2 = vld [vmem:[%s226_s0 + $0xa] sm:$0x3] }
   0x2   :  { %49 = vst [vmem:[#allocation0 + $0x38] sm:$0x3] %v139_v0  ;;  %54 = vst [vmem:[#allocation0 + $0x30] sm:$0x3] %v140_v1  ;;  %v142_v3 = vld [vmem:[%s226_s0 + $0x8] sm:$0x3] }
   0x3   :  { %59 = vst [vmem:[#allocation0 + $0x28] sm:$0x3] %v141_v2  ;;  %v143_v4 = vld [vmem:[%s226_s0 + $0x6] sm:$0x3]  ;;  %v144_v5 = vld [vmem:[%s226_s0 + $0x4] sm:$0x3] }
   0x4   :  { %64 = vst [vmem:[#allocation0 + $0x20] sm:$0x3] %v142_v3  ;;  %69 = vst [vmem:[#allocation0 + $0x18] sm:$0x3] %v143_v4  ;;  %v145_v6 = vld [vmem:[%s226_s0 + $0x2] sm:$0x3] }
   0x5   :  { %74 = vst [vmem:[#allocation0 + $0x10] sm:$0x3] %v144_v5  ;;  %v79_v7 = vld [vmem:[%s226_s0] sm:$0x3]  ;;  %78 = vst [vmem:[#allocation0 + $0x8] sm:$0x3] %v145_v6 }
   0x6   :  { %80 = vst [vmem:[#allocation0] sm:$0x3] %v79_v7  ;;  %v131_v8 = vld [vmem:[%s226_s0 + $0x1e] sm:$0x3]  ;;  %v132_v9 = vld [vmem:[%s226_s0 + $0x1c] sm:$0x3] }
   0x7   :  { %v133_v10 = vld [vmem:[%s226_s0 + $0x1a] sm:$0x3]  ;;  %9 = vst [vmem:[#allocation0 + $0x78] sm:$0x3] %v131_v8  ;;  %14 = vst [vmem:[#allocation0 + $0x70] sm:$0x3] %v132_v9 }
   0x8   :  { %19 = vst [vmem:[#allocation0 + $0x68] sm:$0x3] %v133_v10  ;;  %v134_v11 = vld [vmem:[%s226_s0 + $0x18] sm:$0x3]  ;;  %v135_v12 = vld [vmem:[%s226_s0 + $0x16] sm:$0x3] }
   0x9   :  { %v136_v13 = vld [vmem:[%s226_s0 + $0x14] sm:$0x3]  ;;  %24 = vst [vmem:[#allocation0 + $0x60] sm:$0x3] %v134_v11  ;;  %29 = vst [vmem:[#allocation0 + $0x58] sm:$0x3] %v135_v12 }
   0xa   :  { %34 = vst [vmem:[#allocation0 + $0x50] sm:$0x3] %v136_v13  ;;  %v137_v14 = vld [vmem:[%s226_s0 + $0x12] sm:$0x3]  ;;  %v138_v15 = vld [vmem:[%s226_s0 + $0x10] sm:$0x3] }
   0xb   :  { %39 = vst [vmem:[#allocation0 + $0x48] sm:$0x3] %v137_v14  ;;  %44 = vst [vmem:[#allocation0 + $0x40] sm:$0x3] %v138_v15  ;;  %s149_s0 = smov 64  }
   0xc   :  { %v99_v16 = vld [vmem:[#allocation0 + $0x1] ss:$8 sm:$0xf0]   ;;  %v82_v17 = vld [vmem:[#allocation0] ss:$8 sm:$0xf0]  }
   0xd   :  { %v97_v18 = vld [vmem:[#allocation0 + $0x1] ss:$8 sm:$0xf]   ;;  %v81_v19 = vld [vmem:[#allocation0] ss:$8 sm:$0xf]  }
   0xe   :  { %v101_v20 = vsel %vm83_vm0, %v99_v16, %v97_v18  ;;  %v84_v21 = vsel %vm83_vm0, %v82_v17, %v81_v19 }
   0xf   :  { %102 = vrot.lane.b32.xlu0 %v101_v20, %s149_s0  ;;  %86 = vst.msk [vmem:[%s227_s1] sm:$0xff] %vm85_vm1, %v84_v21  }
  0x10   :  { %v109_v22 = vld [vmem:[#allocation0 + $0x41] ss:$8 sm:$0xf0]   ;;  %v90_v23 = vld [vmem:[#allocation0 + $0x40] ss:$8 sm:$0xf0]  }
  0x12   :  { %v107_v24 = vld [vmem:[#allocation0 + $0x41] ss:$8 sm:$0xf]   ;;  %v88_v25 = vld [vmem:[#allocation0 + $0x40] ss:$8 sm:$0xf]  }
  0x13   :  { %v111_v26 = vsel %vm83_vm0, %v109_v22, %v107_v24  ;;  %v92_v27 = vsel %vm83_vm0, %v90_v23, %v88_v25 }
  0x14   :  { %146 = vst.msk [vmem:[%s227_s1 + $0x8] sm:$0xff] %vm85_vm1, %v92_v27   ;;  %112 = vrot.lane.b32.xlu0 %v111_v26, %s149_s0 }
  0x81   :  { %v103_v28 = vpop.permute.xlu0 %102  }
  0x82   :  { %105 = vst.msk [vmem:[%s227_s1] sm:$0xff] %vm104_vm2, %v103_v28  }
  0x86   :  { %v113_v29 = vpop.permute.xlu0 %112  }
  0x87   :  { %147 = vst.msk [vmem:[%s227_s1 + $0x8] sm:$0xff] %vm104_vm2, %v113_v29  }

// kernel: cnn_forward.1
= control target key start
LH: loop header
LB: loop body
LE: loop exit
PB: predicated region body
PF: predicated region fallthrough
CT: control target
= control target key end

     0   :  { %vm71_vm0 = vcmask 130048   ;;  %v310_v3 = vmov 0   ;;  %s385_s0 = inlined_call_operand.vmem [shape: bf16[16,128], index: 0, kind: input, shape index: {}]   ;;  %s386_s1 = inlined_call_operand.vmem [shape: bf16[32,16], index: 1, kind: input, shape index: {}]   ;;  %s387_s2 = inlined_call_operand.vmem [shape: f32[32,1], index: 2, kind: input, shape index: {}]   ;;  %s388_s3 = inlined_call_operand.vmem [shape: f32[2,8,128], index: 3, kind: input, shape index: {}]   ;;  %s389_s4 = inlined_call_operand.vmem [shape: f32[1,2], index: 4, kind: input, shape index: {}]   ;;  %s390_s5 = inlined_call_operand.vmem [shape: f32[2,128], index: 5, kind: input, shape index: {}]   ;;  %s391_s6 = inlined_call_operand.hbm [shape: f32[2,2], index: 6, kind: output, shape index: {}]  }
   0x1   :  { %v285_v0 = vld [vmem:[%s385_s0] sm:$0xff]   ;;  %v287_v2 = vld [vmem:[%s386_s1 + $0x8] sm:$0xff]   ;;  %284 = vset.pattern.permute.xlu1 %v310_v3  ;;  %v33_v4 = vld [vmem:[%s387_s2 + $0x10] sm:$0xff]  ;;  %283 = vset.pattern.permute.xlu0 %v310_v3 }
   0x2   :  { %v286_v1 = vld [vmem:[%s386_s1] sm:$0xff]   ;;  %268 = vmatprep.subr.bf16.mxu0 %v285_v0  ;;  %47 = vperm.xlu1 %284, %v33_v4  }
   0x3   :  { %269 = vmatpush3.bf16.msra.mxu0 %v285_v0  ;;  %270 = vmatprep.mubr.msk.bf16.mxu0 %vm71_vm0, %v286_v1  ;;  %v31_v5 = vld [vmem:[%s387_s2] sm:$0xff] }
   0x4   :  { %11 = vsyncpa [#allocation3], 0  ;;  %37 = vperm.xlu0 %283, %v31_v5   ;;  %v34_v6 = vld [vmem:[%s387_s2 + $0x18] sm:$0xff]  ;;  %v32_v7 = vld [vmem:[%s387_s2 + $0x8] sm:$0xff]  ;;  %v311_v8 = vmov 0.0   ;;  %vm312_vm1 = vmmov 0  }
   0x5   :  { %274 = vmatprep.subr.mxu1 %v311_v8  ;;  %276 = vmatprep.mubr.msk.f32.mxu1 %vm312_vm1, %v311_v8  ;;  %v142_v31 = vld [vmem:[%s388_s3] sm:$0xff]  ;;  %v143_v32 = vld [vmem:[%s388_s3 + $0x8] sm:$0xff]  ;;  %vm168_vm6 = vcmask 1041409   ;;  %s313_s15 = smov [#allocation2]   ;;  %vm241_vm7 = vcmask 9216  }
   0x6   :  { %271 = vmatmul.mubr.msk.bf16.vlgmr.msra.gmra.mxu0 %vm71_vm0, %v287_v2  ;;  %52 = vperm.xlu1 %284, %v34_v6   ;;  %v158_v49 = vld [vmem:[%s390_s5] sm:$0x3]  ;;  %s249_s16 = sshll.u32 %s313_s15, 4  ;;  %s250_s16 = int_to_ptr.vmem [resolvable:$true] %s249_s16 }
   0x7   :  { %v262_v50 = vld [vmem:[%s389_s4] ss:$0 sm:$0xff]  ;;  %s288_s17 = scalar_lea.vmem %s250_s16, 32  ;;  %p293_p1 = scmp.lt.s32.totalorder %s250_s16, %s250_s16 }
   0x8   :  { %42 = vperm.xlu0 %283, %v32_v7   ;;  %p289_p0 = scmp.ne.s32.totalorder %s250_s16, %s288_s17  ;;  %p294_p2 = scmp.lt.s32.totalorder %s288_s17, %s288_s17 }
   0xa   :  { %p295_p3 = por %p294_p2, %p293_p1 }
   0xc   :  { %p296_p4 = pnand %p295_p3, %p289_p0 }
  0x7d   :  { %v48_v9 = vpop.permute.xlu1 %47 }
  0x7f   :  { %v38_v10 = vpop.permute.xlu0 %37 }
  0x81   :  { %v53_v15 = vpop.permute.xlu1 %52 }
  0x83   :  { %v43_v19 = vpop.permute.xlu0 %42 }
  0xc6   :  { %v272_v11 = vpop.f32.mrf.mxu0 }
  0xc7   :  { %v121_v12 = vadd.f32 %v272_v11, %v48_v9 }
  0xc8   :  { %v112_v13 = vpop.f32.mrf.mxu0 }
  0xc9   :  { %v113_v14 = vadd.f32 %v112_v13, %v38_v10  ;;  %v133_v18 = vmul.f32 0.01, %v121_v12  ;;  %vm129_vm3 = vcmp.gt.f32.partialorder %v121_v12, 0.0 }
  0xca   :  { %v273_v16 = vpop.f32.mrf.mxu0 }
  0xcb   :  { %v124_v17 = vadd.f32 %v273_v16, %v53_v15  ;;  %v131_v21 = vmul.f32 0.01, %v113_v14  ;;  %vm127_vm4 = vcmp.gt.f32.partialorder %v113_v14, 0.0  ;;  %v137_v26 = vsel %vm129_vm3, %v121_v12, %v133_v18 }
  0xcc   :  { %v115_v20 = vpop.f32.mrf.mxu0 }
  0xcd   :  { %vm130_vm2 = vcmp.gt.f32.partialorder %v124_v17, 0.0  ;;  %v134_v22 = vmul.f32 0.01, %v124_v17  ;;  %v116_v23 = vadd.f32 %v115_v20, %v43_v19  ;;  %v135_v27 = vsel %vm127_vm4, %v113_v14, %v131_v21 }
  0xcf   :  { %v138_v24 = vsel %vm130_vm2, %v124_v17, %v134_v22  ;;  %vm128_vm5 = vcmp.gt.f32.partialorder %v116_v23, 0.0  ;;  %v132_v25 = vmul.f32 0.01, %v116_v23 }
  0xd0   :  { %v140_v29 = vmax.f32 %v137_v26, %v138_v24 }
  0xd1   :  { %v136_v28 = vsel %vm128_vm5, %v116_v23, %v132_v25 }
  0xd2   :  { %v139_v30 = vmax.f32 %v135_v27, %v136_v28 }
  0xd4   :  { %v141_v33 = vmax.f32 %v139_v30, %v140_v29 }
  0xd6   :  { %v144_v34 = vmul.f32 %v142_v31, %v141_v33  ;;  %v145_v35 = vmul.f32 %v143_v32, %v141_v33 }
  0xd8   :  { %v146_v36 = vrot.slane %v144_v34, 4  ;;  %v152_v37 = vrot.slane %v145_v35, 4 }
  0xda   :  { %v147_v38 = vadd.f32 %v146_v36, %v144_v34  ;;  %v153_v39 = vadd.f32 %v152_v37, %v145_v35 }
  0xdc   :  { %v148_v40 = vrot.slane %v147_v38, 2  ;;  %v154_v41 = vrot.slane %v153_v39, 2 }
  0xde   :  { %v149_v42 = vadd.f32 %v148_v40, %v147_v38  ;;  %v155_v43 = vadd.f32 %v154_v41, %v153_v39 }
  0xe0   :  { %v150_v44 = vrot.slane %v149_v42, 1  ;;  %v156_v45 = vrot.slane %v155_v43, 1 }
  0xe2   :  { %v151_v46 = vadd.f32 %v150_v44, %v149_v42  ;;  %v157_v47 = vadd.f32 %v156_v45, %v155_v43 }
  0xe4   :  { %v169_v48 = vsel %vm168_vm6, %v157_v47, %v151_v46 }
  0xe5   :  { %275 = vmatpush3.xpose.msra.mxu1 %v169_v48 }
  0xe8   :  { %277 = vmatmul.mubr.f32.vlgmr.msra.gmra.mxu1 %v158_v49 }
 0x1a8   :  { %v237_v51 = vpop.f32.mrf.mxu1 }
 0x1a9   :  { %v238_v52 = vadd.f32 %v262_v50, %v237_v51 }
 0x1aa   :  { %v278_v53 = vpop.f32.mrf.mxu1 }
 0x1ab   :  { %242 = vst.msk [vmem:[#allocation2] sm:$0x3] %vm241_vm7, %v238_v52 }
 0x1ac   :  { %299 = shalt.err (!%p296_p4)
}
 0x1ad   :  { %252 = dma.vmem_to_hbm [thread:$0]  %s250_s16, 32, %s391_s6, [#allocation3]  }
 0x1ae   :  { %308 = dma.done.wait [#allocation3], 32  }
 0x1af   :  { %309 = vsyncadd [#allocation3], 4294967264 }
 0x1b0   :  { %256 = vsyncpa [#allocation3], 1 }

</bundles_post_ra>
